<compile_context>
chip_gen: v6e
topology: v6e:2x2x1
jax: 0.10.0
libtpu: 0.0.40
codegen_flags: <defaults>
</compile_context>

<pallas_src>
import functools

import jax
import jax.numpy as jnp
from jax.experimental import pallas as pl
from jax.experimental.pallas import tpu as pltpu

HIGH = jax.lax.Precision.HIGHEST  # reference path only


def _pick_tile(total, candidates):
    for c in candidates:
        if total >= c and total % c == 0:
            return c
    return total


def _vmem_limit_bytes():
    # ~75% of physical VMEM: ~96 MiB on v5e/v6e (128 MiB), ~48 MiB on v7x (64 MiB).
    try:
        cap = pltpu.get_tpu_info().vmem_capacity_bytes
        return int(cap * 3 // 4)
    except Exception:
        return 48 * 1024 * 1024


# --------------------------------------------------------------------------- #
# Backbone stand-in: 3x3 conv (stride 1, pad 1) + ReLU on the MXU.
# TODO(synk): real module uses a pretrained, cropped ResNet-50 backbone; at
# real backbone sizes one would avoid the 9x im2col HBM blow-up (accumulate 9
# shifted dots in-kernel or leave the conv to XLA) — acceptable for this
# single-conv stand-in.
# --------------------------------------------------------------------------- #
def _conv_kernel(p_ref, w_ref, b_ref, o_ref):
    # p_ref: (1, 9*Cin, tn) bf16   w_ref: (Cout, 9*Cin) bf16   b_ref: (Cout, 1) f32
    acc = jnp.dot(w_ref[...], p_ref[0], preferred_element_type=jnp.float32)
    o_ref[0] = jnp.maximum(acc + b_ref[...], 0.0)


def conv3x3_relu(x_nchw, w_oihw, b):
    B, Cin, H, W = x_nchw.shape
    Cout = w_oihw.shape[0]
    HW = H * W

    # im2col in NCHW orientation -> (B, 9*Cin, HW); bf16 for MXU + half DMA.
    xp = jnp.pad(x_nchw, ((0, 0), (0, 0), (1, 1), (1, 1)))
    patches = jnp.concatenate(
        [xp[:, :, dy:dy + H, dx:dx + W] for dy in range(3) for dx in range(3)],
        axis=1).reshape(B, 9 * Cin, HW).astype(jnp.bfloat16)
    # wmat[co, (dy*3+dx)*Cin + ci] = w[co, ci, dy, dx]
    wmat = jnp.transpose(w_oihw, (0, 2, 3, 1)).reshape(Cout, 9 * Cin)
    wmat = wmat.astype(jnp.bfloat16)
    b2d = b.reshape(Cout, 1).astype(jnp.float32)

    tn = _pick_tile(HW, (512, 256, 128))
    out = pl.pallas_call(
        _conv_kernel,
        out_shape=jax.ShapeDtypeStruct((B, Cout, HW), jnp.float32),
        grid=(B, HW // tn),
        in_specs=[
            pl.BlockSpec((1, 9 * Cin, tn), lambda bi, j: (bi, 0, j)),
            pl.BlockSpec((Cout, 9 * Cin), lambda bi, j: (0, 0)),
            pl.BlockSpec((Cout, 1), lambda bi, j: (0, 0)),
        ],
        out_specs=pl.BlockSpec((1, Cout, tn), lambda bi, j: (bi, 0, j)),
        compiler_params=pltpu.CompilerParams(
            dimension_semantics=("parallel", "parallel"),
            vmem_limit_bytes=_vmem_limit_bytes()),
    )(patches, wmat, b2d)
    # already (B, Cout, HW) == NCHW feature map .flatten(2); no transpose needed
    return out


# --------------------------------------------------------------------------- #
# MixVPR aggregator kernel: grid (B, C//tc), accumulated reassociated proj.
# --------------------------------------------------------------------------- #
def _mixvpr_kernel(f_ref, g_ref, bt_ref, w1_ref, b1_ref, w2_ref, b2_ref,
                   wc_ref, bias_ref, wr_ref, o_ref, acc_ref,
                   *, depth, eps, inv_n):
    c_idx = pl.program_id(1)

    @pl.when(c_idx == 0)
    def _():
        acc_ref[...] = jnp.zeros_like(acc_ref)

    f = f_ref[0]                                                  # (tc, N) f32

    for d in range(depth):                                        # static unroll
        # LayerNorm over N: fused sum / sum-of-squares (one reduction pass).
        s = jnp.sum(f, axis=-1, keepdims=True)
        ss = jnp.sum(f * f, axis=-1, keepdims=True)
        mu = s * inv_n
        var = jnp.maximum(ss * inv_n - mu * mu, 0.0)
        xn = (f - mu) * jax.lax.rsqrt(var + eps)
        xn = xn * g_ref[d][None, :] + bt_ref[d][None, :]
        # MLP: Linear(N->H) + ReLU + Linear(H->N), residual (bf16 MXU, f32 acc)
        h = jnp.dot(xn.astype(jnp.bfloat16), w1_ref[d],
                    preferred_element_type=jnp.float32) + b1_ref[d][None, :]
        h = jnp.maximum(h, 0.0)
        f = f + jnp.dot(h.astype(jnp.bfloat16), w2_ref[d],
                        preferred_element_type=jnp.float32) + b2_ref[d][None, :]

    # Reassociated projection: partial z = Wc[:, tile] @ (f_tile @ Wr)
    y = jnp.dot(f.astype(jnp.bfloat16), wr_ref[...],
                preferred_element_type=jnp.float32)               # (tc, out_r)
    acc_ref[...] += jnp.dot(wc_ref[...], y.astype(jnp.bfloat16),
                            preferred_element_type=jnp.float32)   # (out_c, out_r)

    @pl.when(c_idx == pl.num_programs(1) - 1)
    def _():
        # bias_ref already folds channel_proj bias through Wr plus row_proj bias
        z = acc_ref[...] + bias_ref[...]
        ssq = jnp.sum(z * z)
        o_ref[0] = z * jax.lax.rsqrt(ssq + 1e-24)


def mixvpr_aggregate(feat, agg, *, depth, eps=1e-5):
    B, C, N = feat.shape
    out_c = agg["wc"].shape[0]
    out_r = agg["wr"].shape[1]

    # tc must be a multiple of 128 (or C itself) so the (out_c, tc) Wc block
    # satisfies the lane-tiling constraint.
    tc = _pick_tile(C, (256, 128))

    bf = jnp.bfloat16
    w1 = agg["w1"].astype(bf)
    w2 = agg["w2"].astype(bf)
    wc = agg["wc"].astype(bf)
    wr = agg["wr"].astype(bf)
    # fold: (Wc f + bc 1^T) Wr + br  ==  Wc (f Wr) + outer(bc, Wr.sum(0)) + br
    bias_proj = (agg["bc"][:, None] * jnp.sum(agg["wr"], axis=0)[None, :]
                 + agg["br"][None, :]).astype(jnp.float32)        # (out_c, out_r)

    def const_spec(shape):
        nd = len(shape)
        return pl.BlockSpec(shape, lambda bi, ci, _n=nd: (0,) * _n)

    kernel = functools.partial(_mixvpr_kernel, depth=depth, eps=eps,
                               inv_n=1.0 / float(N))
    out = pl.pallas_call(
        kernel,
        out_shape=jax.ShapeDtypeStruct((B, out_c, out_r), jnp.float32),
        grid=(B, C // tc),
        in_specs=[
            pl.BlockSpec((1, tc, N), lambda bi, ci: (bi, ci, 0)),
            const_spec(agg["gamma"].shape), const_spec(agg["beta"].shape),
            const_spec(w1.shape), const_spec(agg["b1"].shape),
            const_spec(w2.shape), const_spec(agg["b2"].shape),
            pl.BlockSpec((out_c, tc), lambda bi, ci: (0, ci)),
            const_spec(bias_proj.shape),
            const_spec(wr.shape),
        ],
        out_specs=pl.BlockSpec((1, out_c, out_r), lambda bi, ci: (bi, 0, 0)),
        scratch_shapes=[pltpu.VMEM((out_c, out_r), jnp.float32)],
        compiler_params=pltpu.CompilerParams(
            dimension_semantics=("parallel", "arbitrary"),
            vmem_limit_bytes=_vmem_limit_bytes()),
    )(feat, agg["gamma"], agg["beta"], w1, agg["b1"], w2, agg["b2"],
      wc, bias_proj, wr)
    # TODO(synk): output kept (B, out_c, out_r) (tiny vs feature traffic); the
    # wrapper flatten below is a free contiguous reshape in XLA.
    return out.reshape(B, out_c * out_r)


# --------------------------------------------------------------------------- #
# Full model forward (backbone -> aggregator), plus pure-JAX reference.
# --------------------------------------------------------------------------- #
def mixvpr_model_forward(x, params):
    feat = conv3x3_relu(x, params["conv_w"], params["conv_b"])    # (B, C, N)
    return mixvpr_aggregate(feat, params["agg"], depth=params["depth"])


def reference_forward(x, params, eps=1e-5):
    agg = params["agg"]
    B, Cin, H, W = x.shape
    f = jax.lax.conv_general_dilated(
        x, params["conv_w"], (1, 1), "SAME",
        dimension_numbers=("NCHW", "OIHW", "NCHW"), precision=HIGH)
    f = jnp.maximum(f + params["conv_b"][None, :, None, None], 0.0)
    f = f.reshape(B, f.shape[1], H * W)                            # (B, C, N)
    for d in range(params["depth"]):
        mu = f.mean(-1, keepdims=True)
        var = jnp.square(f - mu).mean(-1, keepdims=True)
        xn = (f - mu) * jax.lax.rsqrt(var + eps)
        xn = xn * agg["gamma"][d] + agg["beta"][d]
        h = jnp.maximum(
            jnp.einsum("bcn,nh->bch", xn, agg["w1"][d], precision=HIGH)
            + agg["b1"][d], 0.0)
        f = f + jnp.einsum("bch,hn->bcn", h, agg["w2"][d],
                           precision=HIGH) + agg["b2"][d]
    y = jnp.einsum("bcn,oc->bon", f, agg["wc"],
                   precision=HIGH) + agg["bc"][None, :, None]
    z = jnp.einsum("bon,nr->bor", y, agg["wr"],
                   precision=HIGH) + agg["br"][None, None, :]
    z = z.reshape(B, -1)
    return z / jnp.maximum(jnp.linalg.norm(z, axis=-1, keepdims=True), 1e-12)


def make_params(key, *, cin, cfeat, n, out_c, out_r, depth, ratio=1):
    hidden = n * ratio
    ks = jax.random.split(key, 9)
    agg = {
        "gamma": jnp.ones((depth, n), jnp.float32),
        "beta": jnp.zeros((depth, n), jnp.float32),
        # stored pre-transposed relative to torch nn.Linear.weight
        "w1": 0.05 * jax.random.normal(ks[0], (depth, n, hidden), jnp.float32),
        "b1": 0.01 * jax.random.normal(ks[1], (depth, hidden), jnp.float32),
        "w2": 0.05 * jax.random.normal(ks[2], (depth, hidden, n), jnp.float32),
        "b2": 0.01 * jax.random.normal(ks[3], (depth, n), jnp.float32),
        "wc": 0.05 * jax.random.normal(ks[4], (out_c, cfeat), jnp.float32),
        "bc": 0.01 * jax.random.normal(ks[5], (out_c,), jnp.float32),
        "wr": 0.05 * jax.random.normal(ks[6], (n, out_r), jnp.float32),
        "br": 0.01 * jax.random.normal(ks[7], (out_r,), jnp.float32),
    }
    return {
        "conv_w": 0.1 * jax.random.normal(ks[8], (cfeat, cin, 3, 3), jnp.float32),
        "conv_b": jnp.zeros((cfeat,), jnp.float32),
        "agg": agg,
        "depth": depth,
    }


if __name__ == "__main__":
    # Small synthetic shapes; Cfeat=384 with tc=128 exercises the 3-step
    # C-tiled accumulation path in the aggregator.
    B, Cin, H, W = 2, 4, 16, 16          # NCHW input
    Cfeat, out_c, out_r, depth = 384, 64, 4, 2
    N = H * W

    key = jax.random.PRNGKey(0)
    kx, kp = jax.random.split(key)
    x = jax.random.normal(kx, (B, Cin, H, W), jnp.float32)
    params = make_params(kp, cin=Cin, cfeat=Cfeat, n=N,
                         out_c=out_c, out_r=out_r, depth=depth)

    out = jax.block_until_ready(mixvpr_model_forward(x, params))
    ref = jax.block_until_ready(reference_forward(x, params))

    assert out.shape == (B, out_c * out_r), out.shape
    err = float(jnp.max(jnp.abs(out - ref)))
    # bf16 MXU operands vs f32-HIGHEST reference on an L2-normalized output
    assert err < 2e-2, err

    print("KERNEL_OK")
</pallas_src>

<mosaic_0001>
module attributes {stable_mosaic.version = 11 : i64} {
  func.func @_conv_kernel(%arg0: i32, %arg1: i32, %arg2: memref<1x36x256xbf16, #tpu.memory_space<vmem>>, %arg3: memref<384x36xbf16, #tpu.memory_space<vmem>>, %arg4: memref<384x1xf32, #tpu.memory_space<vmem>>, %arg5: memref<1x384x256xf32, #tpu.memory_space<vmem>>) attributes {dimension_semantics = [#tpu.dimension_semantics<parallel>, #tpu.dimension_semantics<parallel>], iteration_bounds = array<i64: 2, 1>, scalar_prefetch = 0 : i64, scratch_operands = 0 : i64, tpu.core_type = #tpu.core_type<tc>, window_params = [{transform_indices = @transform_0, window_bounds = array<i64: 1, 36, 256>}, {pipeline_mode = #tpu.pipeline_mode<synchronous>, transform_indices = @transform_1, window_bounds = array<i64: 384, 36>}, {pipeline_mode = #tpu.pipeline_mode<synchronous>, transform_indices = @transform_2, window_bounds = array<i64: 384, 1>}, {transform_indices = @transform_3, window_bounds = array<i64: 1, 384, 256>}]} {
    %c0 = arith.constant 0 : index
    %c0_0 = arith.constant 0 : index
    %0 = vector.load %arg3[%c0, %c0_0] : memref<384x36xbf16, #tpu.memory_space<vmem>>, vector<384x36xbf16>
    %c0_1 = arith.constant 0 : index
    %c0_2 = arith.constant 0 : index
    %c0_3 = arith.constant 0 : index
    %1 = vector.load %arg2[%c0_1, %c0_2, %c0_3] : memref<1x36x256xbf16, #tpu.memory_space<vmem>>, vector<1x36x256xbf16>
    %2 = vector.shape_cast %1 : vector<1x36x256xbf16> to vector<36x256xbf16>
    %cst = arith.constant dense<0.000000e+00> : vector<384x256xf32>
    %3 = tpu.matmul %0, %2, %cst {dimension_numbers = #tpu.dot_dimension_numbers<[1], [0], [0], [1], [0, 0, 1, 1], [], []>} : vector<384x36xbf16>, vector<36x256xbf16>, vector<384x256xf32> -> vector<384x256xf32>
    %c0_4 = arith.constant 0 : index
    %c0_5 = arith.constant 0 : index
    %4 = vector.load %arg4[%c0_4, %c0_5] : memref<384x1xf32, #tpu.memory_space<vmem>>, vector<384x1xf32>
    %5 = vector.broadcast %4 : vector<384x1xf32> to vector<384x256xf32>
    %6 = arith.addf %3, %5 : vector<384x256xf32>
    %cst_6 = arith.constant 0.000000e+00 : f32
    %7 = vector.broadcast %cst_6 : f32 to vector<384x256xf32>
    %8 = arith.maximumf %6, %7 : vector<384x256xf32>
    %c0_7 = arith.constant 0 : index
    %c0_8 = arith.constant 0 : index
    %c0_9 = arith.constant 0 : index
    %9 = vector.load %arg5[%c0_7, %c0_8, %c0_9] : memref<1x384x256xf32, #tpu.memory_space<vmem>>, vector<1x384x256xf32>
    %10 = vector.shape_cast %9 : vector<1x384x256xf32> to vector<384x256xf32>
    %11 = vector.shape_cast %8 : vector<384x256xf32> to vector<1x384x256xf32>
    tpu.vector_store %arg5[%c0_7, %c0_8, %c0_9], %11 {strides = array<i32>} : memref<1x384x256xf32, #tpu.memory_space<vmem>>, vector<1x384x256xf32>,
    return
  }
  func.func @transform_0(%arg0: i32, %arg1: i32) -> (i32, i32, i32) {
    %c0_i32 = arith.constant 0 : i32
    %c0_i32_0 = arith.constant 0 : i32
    return %arg0, %c0_i32, %arg1 : i32, i32, i32
  }
  func.func @transform_1(%arg0: i32, %arg1: i32) -> (i32, i32) {
    %c0_i32 = arith.constant 0 : i32
    %c0_i32_0 = arith.constant 0 : i32
    %c0_i32_1 = arith.constant 0 : i32
    return %c0_i32, %c0_i32_0 : i32, i32
  }
  func.func @transform_2(%arg0: i32, %arg1: i32) -> (i32, i32) {
    %c0_i32 = arith.constant 0 : i32
    %c0_i32_0 = arith.constant 0 : i32
    %c0_i32_1 = arith.constant 0 : i32
    return %c0_i32, %c0_i32_0 : i32, i32
  }
  func.func @transform_3(%arg0: i32, %arg1: i32) -> (i32, i32, i32) {
    %c0_i32 = arith.constant 0 : i32
    %c0_i32_0 = arith.constant 0 : i32
    return %arg0, %c0_i32, %arg1 : i32, i32, i32
  }
}

</mosaic_0001>

<bundles_post_ra>
// kernel: tpu_custom_call.1
= control target key start
LH: loop header
LB: loop body
LE: loop exit
PB: predicated region body
PF: predicated region fallthrough
CT: control target
= control target key end

     0   :  { %8 = vsyncpa [#allocation3], 0  ;;  %s2165_s0 = inlined_call_operand.vmem [shape: bf16[2,36,256], index: 0, kind: input, shape index: {}]   ;;  %s2166_s1 = inlined_call_operand.vmem [shape: bf16[384,36], index: 1, kind: input, shape index: {}]   ;;  %s2167_s2 = inlined_call_operand.vmem [shape: f32[384,1], index: 2, kind: input, shape index: {}]   ;;  %s2168_s3 = inlined_call_operand.hbm [shape: f32[2,384,256], index: 3, kind: output, shape index: {}]  }
   0x1   :  { %10 = vsyncpa [#allocation3 + $0x1], 0  ;;  %s1594_s12 = smov 0   ;;  %s1596_s13 = smov 0  }
   0x2   :  { %s1598_s14 = smov 0   ;;  %s1600_s15 = smov 0  }
   0x3   :  { %s1602_s16 = smov 0   ;;  %s1604_s17 = smov 0  }
   0x4 LB: > { %s1327_s18 = sadd.s32 4294967295, %s1568_s17   ;;  %s1328_s19 = sadd.s32 4294967294, %s1568_s17   ;;  %s1568_s17 = sphi %s1604_s17, %s16_s17   ;;  %s1564_s16 = sphi %s1602_s16, %s2175_s16   ;;  %s1560_s15 = sphi %s1600_s15, %s2174_s15   ;;  %s1556_s14 = sphi %s1598_s14, %s2173_s14   ;;  %s1552_s13 = sphi %s1596_s13, %s2172_s13   ;;  %s1548_s12 = sphi %s1594_s12, %s2171_s12  }
   0x5   : > { %s28_s20 = sadd.s32 1, %s1564_s16  ;;  %s107_s21 = sadd.s32 1, %s1556_s14 }
   0x6   : > { %p30_p0 = scmp.ge.s32.totalorder %s28_s20, 2  ;;  %p117_p1 = scmp.ne.s32.totalorder %s1556_s14, %s1552_s13 }
   0x7   : > { %p118_p2 = scmp.eq.s32.totalorder %s1327_s18, 1  ;;  %p123_p3 = scmp.ne.s32.totalorder %s1552_s13, %s1548_s12 }
   0x8   : > { %s2177_s20 = smov (%p30_p0, %s28_s20), 0  ;;  %p124_p5 = scmp.eq.s32.totalorder %s1328_s19, 1 }
   0x9   : > { %p1634_p4 = por %p118_p2, %p117_p1  ;;  %s102_s23 = ssub.s32 %s1564_s16, %s2177_s20 }
   0xa   : > { %p1331_p6 = scmp.ge.s32.totalorder %s1568_s17, 1  ;;  %p105_p7 = scmp.eq.s32.totalorder %s102_s23, 0 }
   0xb   : > { %p1641_p8 = por %p124_p5, %p123_p3  ;;  %p161_p9 = scmp.lt.s32.totalorder %s1568_s17, 3 }
   0xc   : > { %s1647_s25 = scalar_select %p105_p7, %s1556_s14, %s107_s21  }
   0xd   : > { %p162_p10 = pnand %p1331_p6, %p161_p9 }
   0xe   : > { %p190_p11 = scmp.lt.s32.totalorder (!%p162_p10), %s1560_s15, 1  ;;  %s186_s18 = sand.u32 (!%p162_p10), 1, %s1552_s13  }
   0xf   : > { %165 = sbr.rel (%p162_p10) target bundleno = 345 (0x159), region = 32  ;;  %s2120_s29 = scalar_lea.sflag (!%p162_p10), [#allocation3], %s186_s18 }
  0x10   : > { %s1397_s19 = smul.u32 (!%p162_p10), 768, %s186_s18  ;;  %s1571_s4 = smov (!%p162_p10), [#allocation2]  }
  0x11   : > { %s1496_s5 = sshll.u32 (!%p162_p10), %s1571_s4, 4  ;;  %s1497_s5 = int_to_ptr.vmem [resolvable:$false] %s1496_s5 }
  0x12   : > { %s1967_s21 = scalar_lea.vmem (!%p162_p10), [#allocation2], %s1397_s19  ;;  %s1498_s6 = scalar_lea.vmem (!%p162_p10), %s1497_s5, 24576 }
  0x13   : > { %s1248_s26 = sshll.u32 (!%p162_p10), %s1967_s21, 4  ;;  %s2112_s26 = int_to_ptr.vmem [resolvable:$true] %s1248_s26 }
  0x14   : > { %v256_v0 = vld [vmem:[%s2167_s2 + $0x10] sm:$0xff]  ;;  %v254_v1 = vld [vmem:[%s2167_s2] sm:$0xff]  ;;  %v1570_v2 = vmov 0   ;;  %s191_s30 = scalar_select %p190_p11, %s1560_s15, 1  ;;  %v257_v3 = vld [vmem:[%s2167_s2 + $0x18] sm:$0xff]  ;;  %vm760_vm0 = vcmask 1041408  }
  0x15   : > { %1459 = vset.pattern.permute.xlu1 %v1570_v2  ;;  %1458 = vset.pattern.permute.xlu0 %v1570_v2  ;;  %v255_v4 = vld [vmem:[%s2167_s2 + $0x8] sm:$0xff]  ;;  %v258_v6 = vld [vmem:[%s2167_s2 + $0x20] sm:$0xff]  ;;  %v261_v12 = vld [vmem:[%s2167_s2 + $0x38] sm:$0xff]  ;;  %vm687_vm1 = vcmask 293888   ;;  %p1499_p1 = scmp.lt.s32.totalorder %s2112_s26, %s1497_s5 }
  0x16   : > { %314 = vperm.xlu1 %1459, %v256_v0   ;;  %304 = vperm.xlu0 %1458, %v254_v1   ;;  %s1398_s8 = smul.u32 40, %s191_s30  ;;  %v259_v5 = vld [vmem:[%s2167_s2 + $0x28] sm:$0xff]  ;;  %v260_v13 = vld [vmem:[%s2167_s2 + $0x30] sm:$0xff]  ;;  %v262_v17 = vld [vmem:[%s2167_s2 + $0x40] sm:$0xff]  ;;  %s1492_s30 = scalar_lea.vmem %s2112_s26, 12288 }
  0x17   : > { %799 = vmatprep.mubr.bf16.mxu0 %v1570_v2  ;;  %919 = vmatprep.mubr.bf16.mxu1 %v1570_v2  ;;  %v263_v16 = vld [vmem:[%s2167_s2 + $0x48] sm:$0xff]  ;;  %v265_v19 = vld [vmem:[%s2167_s2 + $0x58] sm:$0xff]  ;;  %v264_v20 = vld [vmem:[%s2167_s2 + $0x50] sm:$0xff]  ;;  %p1493_p12 = scmp.ne.s32.totalorder %s2112_s26, %s1492_s30  ;;  %p1500_p2 = scmp.lt.s32.totalorder %s1498_s6, %s1492_s30 }
  0x18   : > { %s197_s23 = scalar_lea.vmem %s2165_s0, %s1398_s8  ;;  %v1468_v21 = vld [vmem:[%s2166_s1] sm:$0xff]   ;;  %v267_v23 = vld [vmem:[%s2167_s2 + $0x68] sm:$0xff]  ;;  %v269_v25 = vld [vmem:[%s2167_s2 + $0x78] sm:$0xff] }
  0x19   : > { %v253_v7 = vld [vmem:[%s197_s23 + $0x20] sm:$0x33]  ;;  %v1462_v10 = vld [vmem:[%s197_s23 + $0x14] ss:$8 sps:$4 sm:$0xff]   ;;  %v1464_v14 = vld [vmem:[%s197_s23 + $0x10] ss:$8 sps:$4 sm:$0xff]   ;;  %p1494_p13 = pnand %p1493_p12, %p1634_p4  ;;  %p1501_p3 = por %p1500_p2, %p1499_p1 }
  0x1a   : > { %319 = vperm.xlu1 %1459, %v257_v3   ;;  %309 = vperm.xlu0 %1458, %v255_v4   ;;  %v1362_v8 = vcombine.high %v253_v7, %v253_v7  ;;  %v1361_v9 = vcombine.low %v253_v7, %v253_v7  ;;  %v1465_v15 = vld [vmem:[%s197_s23 + $0x4] ss:$8 sps:$4 sm:$0xff]   ;;  %v1467_v18 = vld [vmem:[%s197_s23] ss:$8 sps:$4 sm:$0xff]   ;;  %v268_v26 = vld [vmem:[%s2167_s2 + $0x70] sm:$0xff]  ;;  %s1399_s23 = smul.u32 12288, %s1560_s15 }
  0x1b   : > { %v1469_v22 = vld [vmem:[%s2166_s1 + $0x60] sm:$0xff]   ;;  %v1470_v27 = vld [vmem:[%s2166_s1 + $0x8] sm:$0xff]   ;;  %v273_v31 = vld [vmem:[%s2167_s2 + $0x98] sm:$0xff]  ;;  %p1495_p0 = pneg %p1494_p13 }
  0x1c   : > { %v762_v11 = vsel %vm760_vm0, %v1361_v9, 0  ;;  %1363 = vmatprep.subr.msk.bf16.mxu0 %vm760_vm0, %v1362_v8  ;;  %1391 = vmatprep.subr.msk.bf16.mxu1 %vm760_vm0, %v1362_v8  ;;  %v266_v24 = vld [vmem:[%s2167_s2 + $0x60] sm:$0xff]  ;;  %v1471_v28 = vld [vmem:[%s2166_s1 + $0x68] sm:$0xff]   ;;  %v272_v32 = vld [vmem:[%s2167_s2 + $0x90] sm:$0xff]  ;;  %s2110_s28 = scalar_lea.hbm %s2168_s3, %s1399_s23 }
  0x1d   : > { %778 = vmatpush1.bf16.msra.mxu0 %v762_v11  ;;  %1394 = vmatpush1.bf16.msra.mxu1 %v762_v11  ;;  %v271_v29 = vld [vmem:[%s2167_s2 + $0x88] sm:$0xff]  ;;  %v270_v30 = vld [vmem:[%s2167_s2 + $0x80] sm:$0xff]  ;;  %v1472_v33 = vld [vmem:[%s2166_s1 + $0x10] sm:$0xff]   ;;  %p1502_p5 = pnand %p1501_p3, %p1495_p0 }
  0x1e   : > { %329 = vperm.xlu1 %1459, %v259_v5   ;;  %324 = vperm.xlu0 %1458, %v258_v6   ;;  %v1473_v34 = vld [vmem:[%s2166_s1 + $0x70] sm:$0xff]   ;;  %v275_v35 = vld [vmem:[%s2167_s2 + $0xa8] sm:$0xff]  ;;  %v274_v36 = vld [vmem:[%s2167_s2 + $0xa0] sm:$0xff] }
  0x1f   : > { %779 = vmatprep.subr.bf16.mxu0 %v1462_v10  ;;  %1392 = vmatprep.subr.bf16.mxu1 %v1462_v10  ;;  %v277_v37 = vld [vmem:[%s2167_s2 + $0xb8] sm:$0xff]  ;;  %v276_v38 = vld [vmem:[%s2167_s2 + $0xb0] sm:$0xff]  ;;  %v279_v41 = vld [vmem:[%s2167_s2 + $0xc8] sm:$0xff] }
  0x20   : > { %v1474_v39 = vld [vmem:[%s2166_s1 + $0x18] sm:$0xff]   ;;  %v278_v42 = vld [vmem:[%s2167_s2 + $0xc0] sm:$0xff]  ;;  %v280_v44 = vld [vmem:[%s2167_s2 + $0xd0] sm:$0xff] }
  0x21   : > { %780 = vmatpush1.bf16.msra.mxu0 %v1464_v14  ;;  %1395 = vmatpush1.bf16.msra.mxu1 %v1464_v14  ;;  %v1475_v40 = vld [vmem:[%s2166_s1 + $0x78] sm:$0xff]   ;;  %v1476_v45 = vld [vmem:[%s2166_s1 + $0x20] sm:$0xff]   ;;  %v283_v47 = vld [vmem:[%s2167_s2 + $0xe8] sm:$0xff] }
  0x22   : > { %339 = vperm.xlu1 %1459, %v261_v12   ;;  %334 = vperm.xlu0 %1458, %v260_v13   ;;  %v281_v43 = vld [vmem:[%s2167_s2 + $0xd8] sm:$0xff]  ;;  %v1477_v46 = vld [vmem:[%s2166_s1 + $0x80] sm:$0xff]   ;;  %v284_v50 = vld [vmem:[%s2167_s2 + $0xf0] sm:$0xff] }
  0x23   : > { %781 = vmatprep.subr.bf16.mxu0 %v1465_v15  ;;  %1393 = vmatprep.subr.bf16.mxu1 %v1465_v15  ;;  %v282_v48 = vld [vmem:[%s2167_s2 + $0xe0] sm:$0xff]  ;;  %v285_v49 = vld [vmem:[%s2167_s2 + $0xf8] sm:$0xff]  ;;  %v1478_v51 = vld [vmem:[%s2166_s1 + $0x28] sm:$0xff]  }
  0x24   : > { %v1479_v52 = vld [vmem:[%s2166_s1 + $0x88] sm:$0xff]   ;;  %v286_v54 = vld [vmem:[%s2167_s2 + $0x100] sm:$0xff]  ;;  %v289_v55 = vld [vmem:[%s2167_s2 + $0x118] sm:$0xff] }
  0x25   : > { %782 = vmatpush1.bf16.msra.mxu0 %v1467_v18  ;;  %1396 = vmatpush1.bf16.msra.mxu1 %v1467_v18  ;;  %v287_v53 = vld [vmem:[%s2167_s2 + $0x108] sm:$0xff]  ;;  %v288_v56 = vld [vmem:[%s2167_s2 + $0x110] sm:$0xff]  ;;  %v290_v60 = vld [vmem:[%s2167_s2 + $0x120] sm:$0xff] }
  0x26   : > { %349 = vperm.xlu1 %1459, %v263_v16   ;;  %344 = vperm.xlu0 %1458, %v262_v17   ;;  %v1480_v57 = vld [vmem:[%s2166_s1 + $0x30] sm:$0xff]   ;;  %v291_v59 = vld [vmem:[%s2167_s2 + $0x128] sm:$0xff]  ;;  %v293_v61 = vld [vmem:[%s2167_s2 + $0x138] sm:$0xff] }
  0x27   : > { %v1481_v58 = vld [vmem:[%s2166_s1 + $0x90] sm:$0xff]   ;;  %v1482_v63 = vld [vmem:[%s2166_s1 + $0x38] sm:$0xff]   ;;  %v295_v1 = vld [vmem:[%s2167_s2 + $0x148] sm:$0xff] }
  0x28   : > { %1364 = vmatmul.mubr.msk.bf16.vlgmr.msra.gmra.mxu0 %vm687_vm1, %v1468_v21  ;;  %1376 = vmatmul.mubr.msk.bf16.vlgmr.msra.gmra.mxu1 %vm687_vm1, %v1469_v22  ;;  %v292_v62 = vld [vmem:[%s2167_s2 + $0x130] sm:$0xff]  ;;  %v1483_v0 = vld [vmem:[%s2166_s1 + $0x98] sm:$0xff]   ;;  %v294_v3 = vld [vmem:[%s2167_s2 + $0x140] sm:$0xff] }
  0x29   : > { %809 = vmatprep.mubr.bf16.mxu0 %v1570_v2  ;;  %929 = vmatprep.mubr.bf16.mxu1 %v1570_v2  ;;  %v297_v4 = vld [vmem:[%s2167_s2 + $0x158] sm:$0xff]  ;;  %v296_v5 = vld [vmem:[%s2167_s2 + $0x150] sm:$0xff]  ;;  %v1484_v6 = vld [vmem:[%s2166_s1 + $0x40] sm:$0xff]  }
  0x2a   : > { %359 = vperm.xlu1 %1459, %v265_v19   ;;  %354 = vperm.xlu0 %1458, %v264_v20   ;;  %v1485_v7 = vld [vmem:[%s2166_s1 + $0xa0] sm:$0xff]   ;;  %v299_v8 = vld [vmem:[%s2167_s2 + $0x168] sm:$0xff]  ;;  %v301_v10 = vld [vmem:[%s2167_s2 + $0x178] sm:$0xff] }
  0x2b   : > { %v298_v9 = vld [vmem:[%s2167_s2 + $0x160] sm:$0xff]  ;;  %v300_v11 = vld [vmem:[%s2167_s2 + $0x170] sm:$0xff]  ;;  %v1486_v12 = vld [vmem:[%s2166_s1 + $0x48] sm:$0xff]  }
  0x2c   : > { %v1487_v13 = vld [vmem:[%s2166_s1 + $0xa8] sm:$0xff]   ;;  %v1488_v14 = vld [vmem:[%s2166_s1 + $0x50] sm:$0xff]   ;;  %v1490_v16 = vld [vmem:[%s2166_s1 + $0x58] sm:$0xff]  }
  0x2d   : > { %v1489_v15 = vld [vmem:[%s2166_s1 + $0xb0] sm:$0xff]   ;;  %v1491_v17 = vld [vmem:[%s2166_s1 + $0xb8] sm:$0xff]  }
  0x2e   : > { %369 = vperm.xlu1 %1459, %v267_v23   ;;  %364 = vperm.xlu0 %1458, %v266_v24  }
  0x30   : > { %1365 = vmatmul.mubr.msk.bf16.gmra.mxu0 %vm687_vm1, %v1470_v27  ;;  %1377 = vmatmul.mubr.msk.bf16.gmra.mxu1 %vm687_vm1, %v1471_v28 }
  0x31   : > { %819 = vmatprep.mubr.bf16.mxu0 %v1570_v2  ;;  %939 = vmatprep.mubr.bf16.mxu1 %v1570_v2 }
  0x32   : > { %379 = vperm.xlu1 %1459, %v269_v25   ;;  %374 = vperm.xlu0 %1458, %v268_v26  }
  0x36   : > { %389 = vperm.xlu1 %1459, %v271_v29   ;;  %384 = vperm.xlu0 %1458, %v270_v30  }
  0x38   : > { %1366 = vmatmul.mubr.msk.bf16.gmra.mxu0 %vm687_vm1, %v1472_v33  ;;  %1378 = vmatmul.mubr.msk.bf16.gmra.mxu1 %vm687_vm1, %v1473_v34 }
  0x39   : > { %829 = vmatprep.mubr.bf16.mxu0 %v1570_v2  ;;  %949 = vmatprep.mubr.bf16.mxu1 %v1570_v2 }
  0x3a   : > { %399 = vperm.xlu1 %1459, %v273_v31   ;;  %394 = vperm.xlu0 %1458, %v272_v32  }
  0x3e   : > { %409 = vperm.xlu1 %1459, %v275_v35   ;;  %404 = vperm.xlu0 %1458, %v274_v36  }
  0x40   : > { %1367 = vmatmul.mubr.msk.bf16.gmra.mxu0 %vm687_vm1, %v1474_v39  ;;  %1379 = vmatmul.mubr.msk.bf16.gmra.mxu1 %vm687_vm1, %v1475_v40 }
  0x41   : > { %839 = vmatprep.mubr.bf16.mxu0 %v1570_v2  ;;  %959 = vmatprep.mubr.bf16.mxu1 %v1570_v2 }
  0x42   : > { %419 = vperm.xlu1 %1459, %v277_v37   ;;  %414 = vperm.xlu0 %1458, %v276_v38  }
  0x46   : > { %429 = vperm.xlu1 %1459, %v279_v41   ;;  %424 = vperm.xlu0 %1458, %v278_v42  }
  0x48   : > { %1368 = vmatmul.mubr.msk.bf16.gmra.mxu0 %vm687_vm1, %v1476_v45  ;;  %1380 = vmatmul.mubr.msk.bf16.gmra.mxu1 %vm687_vm1, %v1477_v46 }
  0x49   : > { %849 = vmatprep.mubr.bf16.mxu0 %v1570_v2  ;;  %969 = vmatprep.mubr.bf16.mxu1 %v1570_v2 }
  0x4a   : > { %439 = vperm.xlu1 %1459, %v281_v43   ;;  %434 = vperm.xlu0 %1458, %v280_v44  }
  0x4e   : > { %449 = vperm.xlu1 %1459, %v283_v47   ;;  %444 = vperm.xlu0 %1458, %v282_v48  }
  0x50   : > { %1369 = vmatmul.mubr.msk.bf16.gmra.mxu0 %vm687_vm1, %v1478_v51  ;;  %1381 = vmatmul.mubr.msk.bf16.gmra.mxu1 %vm687_vm1, %v1479_v52 }
  0x51   : > { %859 = vmatprep.mubr.bf16.mxu0 %v1570_v2  ;;  %979 = vmatprep.mubr.bf16.mxu1 %v1570_v2 }
  0x52   : > { %459 = vperm.xlu1 %1459, %v285_v49   ;;  %454 = vperm.xlu0 %1458, %v284_v50  }
  0x56   : > { %469 = vperm.xlu1 %1459, %v287_v53   ;;  %464 = vperm.xlu0 %1458, %v286_v54  }
  0x58   : > { %1370 = vmatmul.mubr.msk.bf16.gmra.mxu0 %vm687_vm1, %v1480_v57  ;;  %1382 = vmatmul.mubr.msk.bf16.gmra.mxu1 %vm687_vm1, %v1481_v58 }
  0x59   : > { %869 = vmatprep.mubr.bf16.mxu0 %v1570_v2  ;;  %989 = vmatprep.mubr.bf16.mxu1 %v1570_v2 }
  0x5a   : > { %479 = vperm.xlu1 %1459, %v289_v55   ;;  %474 = vperm.xlu0 %1458, %v288_v56  }
  0x5e   : > { %489 = vperm.xlu1 %1459, %v291_v59   ;;  %484 = vperm.xlu0 %1458, %v290_v60  }
  0x60   : > { %1371 = vmatmul.mubr.msk.bf16.gmra.mxu0 %vm687_vm1, %v1482_v63  ;;  %1383 = vmatmul.mubr.msk.bf16.gmra.mxu1 %vm687_vm1, %v1483_v0 }
  0x61   : > { %879 = vmatprep.mubr.bf16.mxu0 %v1570_v2  ;;  %999 = vmatprep.mubr.bf16.mxu1 %v1570_v2 }
  0x62   : > { %499 = vperm.xlu1 %1459, %v293_v61   ;;  %494 = vperm.xlu0 %1458, %v292_v62  }
  0x66   : > { %509 = vperm.xlu1 %1459, %v295_v1   ;;  %504 = vperm.xlu0 %1458, %v294_v3  }
  0x68   : > { %1372 = vmatmul.mubr.msk.bf16.gmra.mxu0 %vm687_vm1, %v1484_v6  ;;  %1384 = vmatmul.mubr.msk.bf16.gmra.mxu1 %vm687_vm1, %v1485_v7 }
  0x69   : > { %889 = vmatprep.mubr.bf16.mxu0 %v1570_v2  ;;  %1009 = vmatprep.mubr.bf16.mxu1 %v1570_v2 }
  0x6a   : > { %519 = vperm.xlu1 %1459, %v297_v4   ;;  %514 = vperm.xlu0 %1458, %v296_v5  }
  0x6e   : > { %529 = vperm.xlu1 %1459, %v299_v8   ;;  %524 = vperm.xlu0 %1458, %v298_v9  }
  0x70   : > { %1373 = vmatmul.mubr.msk.bf16.gmra.mxu0 %vm687_vm1, %v1486_v12  ;;  %1385 = vmatmul.mubr.msk.bf16.gmra.mxu1 %vm687_vm1, %v1487_v13 }
  0x71   : > { %899 = vmatprep.mubr.bf16.mxu0 %v1570_v2  ;;  %1019 = vmatprep.mubr.bf16.mxu1 %v1570_v2 }
  0x72   : > { %539 = vperm.xlu1 %1459, %v301_v10   ;;  %534 = vperm.xlu0 %1458, %v300_v11  }
  0x78   : > { %1374 = vmatmul.mubr.msk.bf16.gmra.mxu0 %vm687_vm1, %v1488_v14  ;;  %1386 = vmatmul.mubr.msk.bf16.gmra.mxu1 %vm687_vm1, %v1489_v15 }
  0x79   : > { %909 = vmatprep.mubr.bf16.mxu0 %v1570_v2  ;;  %1029 = vmatprep.mubr.bf16.mxu1 %v1570_v2 }
  0x80   : > { %1375 = vmatmul.mubr.msk.bf16.gmra.mxu0 %vm687_vm1, %v1490_v16  ;;  %1387 = vmatmul.mubr.msk.bf16.gmra.mxu1 %vm687_vm1, %v1491_v17 }
  0x91   : > { %v305_v18 = vpop.permute.xlu0 %304  ;;  %v1920_v19 = vpop.permute.xlu1 %314 }
  0x95   : > { %v310_v20 = vpop.permute.xlu0 %309  ;;  %v1922_v21 = vpop.permute.xlu1 %319 }
  0x99   : > { %v1924_v22 = vpop.permute.xlu0 %324  ;;  %v1926_v2 = vpop.permute.xlu1 %329 }
  0x9d   : > { %v1928_v23 = vpop.permute.xlu0 %334  ;;  %v1930_v24 = vpop.permute.xlu1 %339 }
  0xa1   : > { %v1932_v25 = vpop.permute.xlu0 %344  ;;  %v1934_v26 = vpop.permute.xlu1 %349 }
  0xa5   : > { %v1936_v27 = vpop.permute.xlu0 %354  ;;  %v1938_v28 = vpop.permute.xlu1 %359 }
  0xa9   : > { %v1940_v29 = vpop.permute.xlu0 %364  ;;  %v1942_v30 = vpop.permute.xlu1 %369 }
  0xad   : > { %v1944_v31 = vpop.permute.xlu0 %374  ;;  %v1946_v32 = vpop.permute.xlu1 %379 }
  0xb1   : > { %v1948_v33 = vpop.permute.xlu0 %384  ;;  %v1950_v34 = vpop.permute.xlu1 %389 }
  0xb5   : > { %v1952_v35 = vpop.permute.xlu0 %394  ;;  %v1954_v36 = vpop.permute.xlu1 %399 }
  0xb9   : > { %v1956_v37 = vpop.permute.xlu0 %404  ;;  %v1958_v38 = vpop.permute.xlu1 %409 }
  0xbd   : > { %v1960_v39 = vpop.permute.xlu0 %414  ;;  %v1963_v40 = vpop.permute.xlu1 %419 }
  0xc1   : > { %v425_v41 = vpop.permute.xlu0 %424  ;;  %v430_v48 = vpop.permute.xlu1 %429 }
  0xc5   : > { %v435_v61 = vpop.permute.xlu0 %434  ;;  %v440_v11 = vpop.permute.xlu1 %439 }
  0xe8   : > { %v801_v42 = vpop.f32.mrf.mxu0  ;;  %v921_v43 = vpop.f32.mrf.mxu1 }
  0xe9   : > { %v802_v44 = vadd.f32 %v801_v42, %v305_v18  ;;  %v922_v45 = vadd.f32 %v921_v43, %v425_v41 }
  0xea   : > { %v803_v46 = vpop.f32.mrf.mxu0  ;;  %v923_v47 = vpop.f32.mrf.mxu1 }
  0xeb   : > { %v1040_v49 = vmax.f32 %v802_v44, 0.0  ;;  %v1088_v50 = vmax.f32 %v922_v45, 0.0  ;;  %v804_v51 = vadd.f32 %v803_v46, %v305_v18  ;;  %v924_v52 = vadd.f32 %v923_v47, %v425_v41  ;;  %v445_v45 = vpop.permute.xlu0 %444 }
  0xec   : > { %v805_v53 = vpop.f32.mrf.mxu0  ;;  %v925_v54 = vpop.f32.mrf.mxu1 }
  0xed   : > { %1136 = vst [vmem:[%s1967_s21] sm:$0xff] %v1040_v49  ;;  %1184 = vst [vmem:[%s1967_s21 + $0x180] sm:$0xff] %v1088_v50  ;;  %v1041_v55 = vmax.f32 %v804_v51, 0.0  ;;  %v1089_v56 = vmax.f32 %v924_v52, 0.0  ;;  %v806_v57 = vadd.f32 %v805_v53, %v310_v20  ;;  %v926_v58 = vadd.f32 %v925_v54, %v430_v48 }
  0xee   : > { %v807_v59 = vpop.f32.mrf.mxu0  ;;  %v927_v60 = vpop.f32.mrf.mxu1 }
  0xef   : > { %1137 = vst [vmem:[%s1967_s21 + $0x8] sm:$0xff] %v1041_v55  ;;  %1185 = vst [vmem:[%s1967_s21 + $0x188] sm:$0xff] %v1089_v56  ;;  %v1042_v62 = vmax.f32 %v806_v57, 0.0  ;;  %v1090_v63 = vmax.f32 %v926_v58, 0.0  ;;  %v808_v0 = vadd.f32 %v807_v59, %v310_v20  ;;  %v928_v1 = vadd.f32 %v927_v60, %v430_v48  ;;  %v450_v57 = vpop.permute.xlu1 %449 }
  0xf0   : > { %v811_v3 = vpop.f32.mrf.mxu0  ;;  %v931_v4 = vpop.f32.mrf.mxu1 }
  0xf1   : > { %1138 = vst [vmem:[%s1967_s21 + $0x10] sm:$0xff] %v1042_v62  ;;  %1186 = vst [vmem:[%s1967_s21 + $0x190] sm:$0xff] %v1090_v63  ;;  %v1043_v5 = vmax.f32 %v808_v0, 0.0  ;;  %v1091_v6 = vmax.f32 %v928_v1, 0.0  ;;  %v812_v7 = vadd.f32 %v811_v3, %v1920_v19  ;;  %v932_v8 = vadd.f32 %v931_v4, %v435_v61 }
  0xf2   : > { %v813_v9 = vpop.f32.mrf.mxu0  ;;  %v933_v10 = vpop.f32.mrf.mxu1 }
  0xf3   : > { %1139 = vst [vmem:[%s1967_s21 + $0x18] sm:$0xff] %v1043_v5  ;;  %1187 = vst [vmem:[%s1967_s21 + $0x198] sm:$0xff] %v1091_v6  ;;  %v1044_v12 = vmax.f32 %v812_v7, 0.0  ;;  %v1092_v13 = vmax.f32 %v932_v8, 0.0  ;;  %v814_v14 = vadd.f32 %v813_v9, %v1920_v19  ;;  %v934_v15 = vadd.f32 %v933_v10, %v435_v61  ;;  %v455_v6 = vpop.permute.xlu0 %454 }
  0xf4   : > { %v815_v16 = vpop.f32.mrf.mxu0  ;;  %v935_v17 = vpop.f32.mrf.mxu1 }
  0xf5   : > { %1140 = vst [vmem:[%s1967_s21 + $0x20] sm:$0xff] %v1044_v12  ;;  %1188 = vst [vmem:[%s1967_s21 + $0x1a0] sm:$0xff] %v1092_v13  ;;  %v1045_v18 = vmax.f32 %v814_v14, 0.0  ;;  %v1093_v20 = vmax.f32 %v934_v15, 0.0  ;;  %v816_v41 = vadd.f32 %v815_v16, %v1922_v21  ;;  %v936_v42 = vadd.f32 %v935_v17, %v440_v11 }
  0xf6   : > { %v817_v43 = vpop.f32.mrf.mxu0  ;;  %v937_v44 = vpop.f32.mrf.mxu1 }
  0xf7   : > { %1141 = vst [vmem:[%s1967_s21 + $0x28] sm:$0xff] %v1045_v18  ;;  %1189 = vst [vmem:[%s1967_s21 + $0x1a8] sm:$0xff] %v1093_v20  ;;  %v1046_v46 = vmax.f32 %v816_v41, 0.0  ;;  %v1094_v19 = vmax.f32 %v936_v42, 0.0  ;;  %v818_v47 = vadd.f32 %v817_v43, %v1922_v21  ;;  %v938_v48 = vadd.f32 %v937_v44, %v440_v11  ;;  %v460_v18 = vpop.permute.xlu1 %459 }
  0xf8   : > { %v821_v49 = vpop.f32.mrf.mxu0  ;;  %v941_v50 = vpop.f32.mrf.mxu1 }
  0xf9   : > { %1142 = vst [vmem:[%s1967_s21 + $0x30] sm:$0xff] %v1046_v46  ;;  %1190 = vst [vmem:[%s1967_s21 + $0x1b0] sm:$0xff] %v1094_v19  ;;  %v1047_v51 = vmax.f32 %v818_v47, 0.0  ;;  %v1095_v52 = vmax.f32 %v938_v48, 0.0  ;;  %v822_v53 = vadd.f32 %v821_v49, %v1924_v22  ;;  %v942_v54 = vadd.f32 %v941_v50, %v445_v45  ;;  %v465_v50 = vpop.permute.xlu0 %464 }
  0xfa   : > { %v823_v55 = vpop.f32.mrf.mxu0  ;;  %v943_v56 = vpop.f32.mrf.mxu1 }
  0xfb   : > { %1143 = vst [vmem:[%s1967_s21 + $0x38] sm:$0xff] %v1047_v51  ;;  %1191 = vst [vmem:[%s1967_s21 + $0x1b8] sm:$0xff] %v1095_v52  ;;  %v1048_v58 = vmax.f32 %v822_v53, 0.0  ;;  %v1096_v21 = vmax.f32 %v942_v54, 0.0  ;;  %v824_v59 = vadd.f32 %v823_v55, %v1924_v22  ;;  %v944_v60 = vadd.f32 %v943_v56, %v445_v45 }
  0xfc   : > { %v825_v61 = vpop.f32.mrf.mxu0  ;;  %v945_v62 = vpop.f32.mrf.mxu1 }
  0xfd   : > { %1144 = vst [vmem:[%s1967_s21 + $0x40] sm:$0xff] %v1048_v58  ;;  %1192 = vst [vmem:[%s1967_s21 + $0x1c0] sm:$0xff] %v1096_v21  ;;  %v1049_v63 = vmax.f32 %v824_v59, 0.0  ;;  %v1097_v0 = vmax.f32 %v944_v60, 0.0  ;;  %v826_v1 = vadd.f32 %v825_v61, %v1926_v2  ;;  %v946_v3 = vadd.f32 %v945_v62, %v450_v57  ;;  %v470_v61 = vpop.permute.xlu1 %469 }
  0xfe   : > { %v827_v4 = vpop.f32.mrf.mxu0  ;;  %v947_v5 = vpop.f32.mrf.mxu1 }
  0xff   : > { %1145 = vst [vmem:[%s1967_s21 + $0x48] sm:$0xff] %v1049_v63  ;;  %1193 = vst [vmem:[%s1967_s21 + $0x1c8] sm:$0xff] %v1097_v0  ;;  %v1050_v7 = vmax.f32 %v826_v1, 0.0  ;;  %v1098_v22 = vmax.f32 %v946_v3, 0.0  ;;  %v828_v8 = vadd.f32 %v827_v4, %v1926_v2  ;;  %v948_v9 = vadd.f32 %v947_v5, %v450_v57 }
 0x100   : > { %v831_v10 = vpop.f32.mrf.mxu0  ;;  %v951_v11 = vpop.f32.mrf.mxu1 }
 0x101   : > { %1146 = vst [vmem:[%s1967_s21 + $0x50] sm:$0xff] %v1050_v7  ;;  %1194 = vst [vmem:[%s1967_s21 + $0x1d0] sm:$0xff] %v1098_v22  ;;  %v1051_v12 = vmax.f32 %v828_v8, 0.0  ;;  %v1099_v13 = vmax.f32 %v948_v9, 0.0  ;;  %v832_v14 = vadd.f32 %v831_v10, %v1928_v23  ;;  %v952_v15 = vadd.f32 %v951_v11, %v455_v6  ;;  %v475_v9 = vpop.permute.xlu0 %474 }
 0x102   : > { %v833_v16 = vpop.f32.mrf.mxu0  ;;  %v953_v17 = vpop.f32.mrf.mxu1 }
 0x103   : > { %1147 = vst [vmem:[%s1967_s21 + $0x58] sm:$0xff] %v1051_v12  ;;  %1195 = vst [vmem:[%s1967_s21 + $0x1d8] sm:$0xff] %v1099_v13  ;;  %v1052_v20 = vmax.f32 %v832_v14, 0.0  ;;  %v1100_v2 = vmax.f32 %v952_v15, 0.0  ;;  %v834_v41 = vadd.f32 %v833_v16, %v1928_v23  ;;  %v954_v42 = vadd.f32 %v953_v17, %v455_v6 }
 0x104   : > { %v835_v43 = vpop.f32.mrf.mxu0  ;;  %v955_v44 = vpop.f32.mrf.mxu1 }
 0x105   : > { %1148 = vst [vmem:[%s1967_s21 + $0x60] sm:$0xff] %v1052_v20  ;;  %1196 = vst [vmem:[%s1967_s21 + $0x1e0] sm:$0xff] %v1100_v2  ;;  %v1053_v45 = vmax.f32 %v834_v41, 0.0  ;;  %v1101_v46 = vmax.f32 %v954_v42, 0.0  ;;  %v836_v19 = vadd.f32 %v835_v43, %v1930_v24  ;;  %v956_v47 = vadd.f32 %v955_v44, %v460_v18  ;;  %v480_v41 = vpop.permute.xlu1 %479 }
 0x106   : > { %v837_v48 = vpop.f32.mrf.mxu0  ;;  %v957_v49 = vpop.f32.mrf.mxu1 }
 0x107   : > { %1149 = vst [vmem:[%s1967_s21 + $0x68] sm:$0xff] %v1053_v45  ;;  %1197 = vst [vmem:[%s1967_s21 + $0x1e8] sm:$0xff] %v1101_v46  ;;  %v1054_v51 = vmax.f32 %v836_v19, 0.0  ;;  %v1102_v23 = vmax.f32 %v956_v47, 0.0  ;;  %v838_v52 = vadd.f32 %v837_v48, %v1930_v24  ;;  %v958_v53 = vadd.f32 %v957_v49, %v460_v18 }
 0x108   : > { %v841_v54 = vpop.f32.mrf.mxu0  ;;  %v961_v55 = vpop.f32.mrf.mxu1 }
 0x109   : > { %1150 = vst [vmem:[%s1967_s21 + $0x70] sm:$0xff] %v1054_v51  ;;  %1198 = vst [vmem:[%s1967_s21 + $0x1f0] sm:$0xff] %v1102_v23  ;;  %v1055_v56 = vmax.f32 %v838_v52, 0.0  ;;  %v1103_v57 = vmax.f32 %v958_v53, 0.0  ;;  %v842_v58 = vadd.f32 %v841_v54, %v1932_v25  ;;  %v962_v21 = vadd.f32 %v961_v55, %v465_v50  ;;  %v485_v23 = vpop.permute.xlu0 %484 }
 0x10a   : > { %v843_v59 = vpop.f32.mrf.mxu0  ;;  %v963_v60 = vpop.f32.mrf.mxu1 }
 0x10b   : > { %1151 = vst [vmem:[%s1967_s21 + $0x78] sm:$0xff] %v1055_v56  ;;  %1199 = vst [vmem:[%s1967_s21 + $0x1f8] sm:$0xff] %v1103_v57  ;;  %v1056_v62 = vmax.f32 %v842_v58, 0.0  ;;  %v1104_v24 = vmax.f32 %v962_v21, 0.0  ;;  %v844_v63 = vadd.f32 %v843_v59, %v1932_v25  ;;  %v964_v0 = vadd.f32 %v963_v60, %v465_v50 }
 0x10c   : > { %v845_v1 = vpop.f32.mrf.mxu0  ;;  %v965_v3 = vpop.f32.mrf.mxu1 }
 0x10d   : > { %1152 = vst [vmem:[%s1967_s21 + $0x80] sm:$0xff] %v1056_v62  ;;  %1200 = vst [vmem:[%s1967_s21 + $0x200] sm:$0xff] %v1104_v24  ;;  %v1057_v4 = vmax.f32 %v844_v63, 0.0  ;;  %v1105_v5 = vmax.f32 %v964_v0, 0.0  ;;  %v846_v6 = vadd.f32 %v845_v1, %v1934_v26  ;;  %v966_v7 = vadd.f32 %v965_v3, %v470_v61  ;;  %v490_v62 = vpop.permute.xlu1 %489 }
 0x10e   : > { %v847_v22 = vpop.f32.mrf.mxu0  ;;  %v967_v8 = vpop.f32.mrf.mxu1 }
 0x10f   : > { %1153 = vst [vmem:[%s1967_s21 + $0x88] sm:$0xff] %v1057_v4  ;;  %1201 = vst [vmem:[%s1967_s21 + $0x208] sm:$0xff] %v1105_v5  ;;  %v1058_v10 = vmax.f32 %v846_v6, 0.0  ;;  %v1106_v25 = vmax.f32 %v966_v7, 0.0  ;;  %v848_v11 = vadd.f32 %v847_v22, %v1934_v26  ;;  %v968_v12 = vadd.f32 %v967_v8, %v470_v61 }
 0x110   : > { %v851_v13 = vpop.f32.mrf.mxu0  ;;  %v971_v14 = vpop.f32.mrf.mxu1 }
 0x111   : > { %1154 = vst [vmem:[%s1967_s21 + $0x90] sm:$0xff] %v1058_v10  ;;  %1202 = vst [vmem:[%s1967_s21 + $0x210] sm:$0xff] %v1106_v25  ;;  %v1059_v15 = vmax.f32 %v848_v11, 0.0  ;;  %v1107_v16 = vmax.f32 %v968_v12, 0.0  ;;  %v852_v17 = vadd.f32 %v851_v13, %v1936_v27  ;;  %v972_v18 = vadd.f32 %v971_v14, %v475_v9 }
 0x112   : > { %v853_v20 = vpop.f32.mrf.mxu0  ;;  %v973_v2 = vpop.f32.mrf.mxu1 }
 0x113   : > { %1155 = vst [vmem:[%s1967_s21 + $0x98] sm:$0xff] %v1059_v15  ;;  %1203 = vst [vmem:[%s1967_s21 + $0x218] sm:$0xff] %v1107_v16  ;;  %v1060_v42 = vmax.f32 %v852_v17, 0.0  ;;  %v1108_v26 = vmax.f32 %v972_v18, 0.0  ;;  %v854_v43 = vadd.f32 %v853_v20, %v1936_v27  ;;  %v974_v44 = vadd.f32 %v973_v2, %v475_v9  ;;  %v495_v9 = vpop.permute.xlu0 %494  ;;  %v500_v2 = vpop.permute.xlu1 %499 }
 0x114   : > { %v855_v45 = vpop.f32.mrf.mxu0  ;;  %v975_v46 = vpop.f32.mrf.mxu1 }
 0x115   : > { %1156 = vst [vmem:[%s1967_s21 + $0xa0] sm:$0xff] %v1060_v42  ;;  %1204 = vst [vmem:[%s1967_s21 + $0x220] sm:$0xff] %v1108_v26  ;;  %v1061_v19 = vmax.f32 %v854_v43, 0.0  ;;  %v1109_v47 = vmax.f32 %v974_v44, 0.0  ;;  %v856_v48 = vadd.f32 %v855_v45, %v1938_v28  ;;  %v976_v49 = vadd.f32 %v975_v46, %v480_v41 }
 0x116   : > { %v857_v50 = vpop.f32.mrf.mxu0  ;;  %v977_v51 = vpop.f32.mrf.mxu1 }
 0x117   : > { %1157 = vst [vmem:[%s1967_s21 + $0xa8] sm:$0xff] %v1061_v19  ;;  %1205 = vst [vmem:[%s1967_s21 + $0x228] sm:$0xff] %v1109_v47  ;;  %v1062_v52 = vmax.f32 %v856_v48, 0.0  ;;  %v1110_v27 = vmax.f32 %v976_v49, 0.0  ;;  %v858_v53 = vadd.f32 %v857_v50, %v1938_v28  ;;  %v978_v54 = vadd.f32 %v977_v51, %v480_v41  ;;  %v505_v50 = vpop.permute.xlu0 %504 }
 0x118   : > { %v861_v55 = vpop.f32.mrf.mxu0  ;;  %v981_v56 = vpop.f32.mrf.mxu1 }
 0x119   : > { %1158 = vst [vmem:[%s1967_s21 + $0xb0] sm:$0xff] %v1062_v52  ;;  %1206 = vst [vmem:[%s1967_s21 + $0x230] sm:$0xff] %v1110_v27  ;;  %v1063_v57 = vmax.f32 %v858_v53, 0.0  ;;  %v1111_v58 = vmax.f32 %v978_v54, 0.0  ;;  %v862_v21 = vadd.f32 %v861_v55, %v1940_v29  ;;  %v982_v59 = vadd.f32 %v981_v56, %v485_v23 }
 0x11a   : > { %v863_v60 = vpop.f32.mrf.mxu0  ;;  %v983_v61 = vpop.f32.mrf.mxu1 }
 0x11b   : > { %1159 = vst [vmem:[%s1967_s21 + $0xb8] sm:$0xff] %v1063_v57  ;;  %1207 = vst [vmem:[%s1967_s21 + $0x238] sm:$0xff] %v1111_v58  ;;  %v1064_v24 = vmax.f32 %v862_v21, 0.0  ;;  %v1112_v28 = vmax.f32 %v982_v59, 0.0  ;;  %v864_v63 = vadd.f32 %v863_v60, %v1940_v29  ;;  %v984_v0 = vadd.f32 %v983_v61, %v485_v23  ;;  %v510_v59 = vpop.permute.xlu1 %509 }
 0x11c   : > { %v865_v1 = vpop.f32.mrf.mxu0  ;;  %v985_v3 = vpop.f32.mrf.mxu1 }
 0x11d   : > { %1160 = vst [vmem:[%s1967_s21 + $0xc0] sm:$0xff] %v1064_v24  ;;  %1208 = vst [vmem:[%s1967_s21 + $0x240] sm:$0xff] %v1112_v28  ;;  %v1065_v4 = vmax.f32 %v864_v63, 0.0  ;;  %v1113_v5 = vmax.f32 %v984_v0, 0.0  ;;  %v866_v6 = vadd.f32 %v865_v1, %v1942_v30  ;;  %v986_v7 = vadd.f32 %v985_v3, %v490_v62 }
 0x11e   : > { %v867_v22 = vpop.f32.mrf.mxu0  ;;  %v987_v8 = vpop.f32.mrf.mxu1 }
 0x11f   : > { %1161 = vst [vmem:[%s1967_s21 + $0xc8] sm:$0xff] %v1065_v4  ;;  %1209 = vst [vmem:[%s1967_s21 + $0x248] sm:$0xff] %v1113_v5  ;;  %v1066_v10 = vmax.f32 %v866_v6, 0.0  ;;  %v1114_v29 = vmax.f32 %v986_v7, 0.0  ;;  %v868_v25 = vadd.f32 %v867_v22, %v1942_v30  ;;  %v988_v11 = vadd.f32 %v987_v8, %v490_v62  ;;  %v515_v6 = vpop.permute.xlu0 %514 }
 0x120   : > { %v871_v12 = vpop.f32.mrf.mxu0  ;;  %v991_v13 = vpop.f32.mrf.mxu1 }
 0x121   : > { %1162 = vst [vmem:[%s1967_s21 + $0xd0] sm:$0xff] %v1066_v10  ;;  %1210 = vst [vmem:[%s1967_s21 + $0x250] sm:$0xff] %v1114_v29  ;;  %v1067_v14 = vmax.f32 %v868_v25, 0.0  ;;  %v1115_v15 = vmax.f32 %v988_v11, 0.0  ;;  %v872_v16 = vadd.f32 %v871_v12, %v1944_v31  ;;  %v992_v17 = vadd.f32 %v991_v13, %v495_v9 }
 0x122   : > { %v873_v18 = vpop.f32.mrf.mxu0  ;;  %v993_v20 = vpop.f32.mrf.mxu1 }
 0x123   : > { %1163 = vst [vmem:[%s1967_s21 + $0xd8] sm:$0xff] %v1067_v14  ;;  %1211 = vst [vmem:[%s1967_s21 + $0x258] sm:$0xff] %v1115_v15  ;;  %v1068_v41 = vmax.f32 %v872_v16, 0.0  ;;  %v1116_v30 = vmax.f32 %v992_v17, 0.0  ;;  %v874_v42 = vadd.f32 %v873_v18, %v1944_v31  ;;  %v994_v26 = vadd.f32 %v993_v20, %v495_v9  ;;  %v520_v15 = vpop.permute.xlu1 %519 }
 0x124   : > { %v875_v43 = vpop.f32.mrf.mxu0  ;;  %v995_v44 = vpop.f32.mrf.mxu1 }
 0x125   : > { %1164 = vst [vmem:[%s1967_s21 + $0xe0] sm:$0xff] %v1068_v41  ;;  %1212 = vst [vmem:[%s1967_s21 + $0x260] sm:$0xff] %v1116_v30  ;;  %v1069_v45 = vmax.f32 %v874_v42, 0.0  ;;  %v1117_v46 = vmax.f32 %v994_v26, 0.0  ;;  %v876_v19 = vadd.f32 %v875_v43, %v1946_v32  ;;  %v996_v47 = vadd.f32 %v995_v44, %v500_v2 }
 0x126   : > { %v877_v48 = vpop.f32.mrf.mxu0  ;;  %v997_v49 = vpop.f32.mrf.mxu1 }
 0x127   : > { %1165 = vst [vmem:[%s1967_s21 + $0xe8] sm:$0xff] %v1069_v45  ;;  %1213 = vst [vmem:[%s1967_s21 + $0x268] sm:$0xff] %v1117_v46  ;;  %v1070_v51 = vmax.f32 %v876_v19, 0.0  ;;  %v1118_v31 = vmax.f32 %v996_v47, 0.0  ;;  %v878_v23 = vadd.f32 %v877_v48, %v1946_v32  ;;  %v998_v52 = vadd.f32 %v997_v49, %v500_v2  ;;  %v525_v45 = vpop.permute.xlu0 %524 }
 0x128   : > { %v881_v27 = vpop.f32.mrf.mxu0  ;;  %v1001_v53 = vpop.f32.mrf.mxu1 }
 0x129   : > { %1166 = vst [vmem:[%s1967_s21 + $0xf0] sm:$0xff] %v1070_v51  ;;  %1214 = vst [vmem:[%s1967_s21 + $0x270] sm:$0xff] %v1118_v31  ;;  %v1071_v54 = vmax.f32 %v878_v23, 0.0  ;;  %v1119_v55 = vmax.f32 %v998_v52, 0.0  ;;  %v882_v56 = vadd.f32 %v881_v27, %v1948_v33  ;;  %v1002_v57 = vadd.f32 %v1001_v53, %v505_v50  ;;  %v530_v53 = vpop.permute.xlu1 %529 }
 0x12a   : > { %v883_v58 = vpop.f32.mrf.mxu0  ;;  %v1003_v21 = vpop.f32.mrf.mxu1 }
 0x12b   : > { %1167 = vst [vmem:[%s1967_s21 + $0xf8] sm:$0xff] %v1071_v54  ;;  %1215 = vst [vmem:[%s1967_s21 + $0x278] sm:$0xff] %v1119_v55  ;;  %v1072_v60 = vmax.f32 %v882_v56, 0.0  ;;  %v1120_v32 = vmax.f32 %v1002_v57, 0.0  ;;  %v884_v61 = vadd.f32 %v883_v58, %v1948_v33  ;;  %v1004_v62 = vadd.f32 %v1003_v21, %v505_v50 }
 0x12c   : > { %v885_v24 = vpop.f32.mrf.mxu0  ;;  %v1005_v28 = vpop.f32.mrf.mxu1 }
 0x12d   : > { %1168 = vst [vmem:[%s1967_s21 + $0x100] sm:$0xff] %v1072_v60  ;;  %1216 = vst [vmem:[%s1967_s21 + $0x280] sm:$0xff] %v1120_v32  ;;  %v1073_v63 = vmax.f32 %v884_v61, 0.0  ;;  %v1121_v0 = vmax.f32 %v1004_v62, 0.0  ;;  %v886_v1 = vadd.f32 %v885_v24, %v1950_v34  ;;  %v1006_v3 = vadd.f32 %v1005_v28, %v510_v59  ;;  %v535_v24 = vpop.permute.xlu0 %534 }
 0x12e   : > { %v887_v4 = vpop.f32.mrf.mxu0  ;;  %v1007_v5 = vpop.f32.mrf.mxu1 }
 0x12f   : > { %1169 = vst [vmem:[%s1967_s21 + $0x108] sm:$0xff] %v1073_v63  ;;  %1217 = vst [vmem:[%s1967_s21 + $0x288] sm:$0xff] %v1121_v0  ;;  %v1074_v7 = vmax.f32 %v886_v1, 0.0  ;;  %v1122_v33 = vmax.f32 %v1006_v3, 0.0  ;;  %v888_v22 = vadd.f32 %v887_v4, %v1950_v34  ;;  %v1008_v8 = vadd.f32 %v1007_v5, %v510_v59 }
 0x130   : > { %v891_v9 = vpop.f32.mrf.mxu0  ;;  %v1011_v10 = vpop.f32.mrf.mxu1 }
 0x131   : > { %1170 = vst [vmem:[%s1967_s21 + $0x110] sm:$0xff] %v1074_v7  ;;  %1218 = vst [vmem:[%s1967_s21 + $0x290] sm:$0xff] %v1122_v33  ;;  %v1075_v29 = vmax.f32 %v888_v22, 0.0  ;;  %v1123_v25 = vmax.f32 %v1008_v8, 0.0  ;;  %v892_v11 = vadd.f32 %v891_v9, %v1952_v35  ;;  %v1012_v12 = vadd.f32 %v1011_v10, %v515_v6  ;;  %v540_v8 = vpop.permute.xlu1 %539 }
 0x132   : > { %v893_v13 = vpop.f32.mrf.mxu0  ;;  %v1013_v14 = vpop.f32.mrf.mxu1 }
 0x133   : > { %1171 = vst [vmem:[%s1967_s21 + $0x118] sm:$0xff] %v1075_v29  ;;  %1219 = vst [vmem:[%s1967_s21 + $0x298] sm:$0xff] %v1123_v25  ;;  %v1076_v16 = vmax.f32 %v892_v11, 0.0  ;;  %v1124_v34 = vmax.f32 %v1012_v12, 0.0  ;;  %v894_v17 = vadd.f32 %v893_v13, %v1952_v35  ;;  %v1014_v18 = vadd.f32 %v1013_v14, %v515_v6 }
 0x134   : > { %v895_v20 = vpop.f32.mrf.mxu0  ;;  %v1015_v2 = vpop.f32.mrf.mxu1 }
 0x135   : > { %1172 = vst [vmem:[%s1967_s21 + $0x120] sm:$0xff] %v1076_v16  ;;  %1220 = vst [vmem:[%s1967_s21 + $0x2a0] sm:$0xff] %v1124_v34  ;;  %v1077_v41 = vmax.f32 %v894_v17, 0.0  ;;  %v1125_v30 = vmax.f32 %v1014_v18, 0.0  ;;  %v896_v42 = vadd.f32 %v895_v20, %v1954_v36  ;;  %v1016_v26 = vadd.f32 %v1015_v2, %v520_v15 }
 0x136   : > { %v897_v43 = vpop.f32.mrf.mxu0  ;;  %v1017_v44 = vpop.f32.mrf.mxu1 }
 0x137   : > { %1173 = vst [vmem:[%s1967_s21 + $0x128] sm:$0xff] %v1077_v41  ;;  %1221 = vst [vmem:[%s1967_s21 + $0x2a8] sm:$0xff] %v1125_v30  ;;  %v1078_v46 = vmax.f32 %v896_v42, 0.0  ;;  %v1126_v35 = vmax.f32 %v1016_v26, 0.0  ;;  %v898_v19 = vadd.f32 %v897_v43, %v1954_v36  ;;  %v1018_v47 = vadd.f32 %v1017_v44, %v520_v15 }
 0x138   : > { %v901_v48 = vpop.f32.mrf.mxu0  ;;  %v1021_v49 = vpop.f32.mrf.mxu1 }
 0x139   : > { %1174 = vst [vmem:[%s1967_s21 + $0x130] sm:$0xff] %v1078_v46  ;;  %1222 = vst [vmem:[%s1967_s21 + $0x2b0] sm:$0xff] %v1126_v35  ;;  %v1079_v50 = vmax.f32 %v898_v19, 0.0  ;;  %v1127_v51 = vmax.f32 %v1018_v47, 0.0  ;;  %v902_v31 = vadd.f32 %v901_v48, %v1956_v37  ;;  %v1022_v23 = vadd.f32 %v1021_v49, %v525_v45 }
 0x13a   : > { %v903_v52 = vpop.f32.mrf.mxu0  ;;  %v1023_v27 = vpop.f32.mrf.mxu1 }
 0x13b   : > { %1175 = vst [vmem:[%s1967_s21 + $0x138] sm:$0xff] %v1079_v50  ;;  %1223 = vst [vmem:[%s1967_s21 + $0x2b8] sm:$0xff] %v1127_v51  ;;  %v1080_v54 = vmax.f32 %v902_v31, 0.0  ;;  %v1128_v36 = vmax.f32 %v1022_v23, 0.0  ;;  %v904_v55 = vadd.f32 %v903_v52, %v1956_v37  ;;  %v1024_v56 = vadd.f32 %v1023_v27, %v525_v45 }
 0x13c   : > { %v905_v57 = vpop.f32.mrf.mxu0  ;;  %v1025_v58 = vpop.f32.mrf.mxu1 }
 0x13d   : > { %1176 = vst [vmem:[%s1967_s21 + $0x140] sm:$0xff] %v1080_v54  ;;  %1224 = vst [vmem:[%s1967_s21 + $0x2c0] sm:$0xff] %v1128_v36  ;;  %v1081_v21 = vmax.f32 %v904_v55, 0.0  ;;  %v1129_v59 = vmax.f32 %v1024_v56, 0.0  ;;  %v906_v60 = vadd.f32 %v905_v57, %v1958_v38  ;;  %v1026_v32 = vadd.f32 %v1025_v58, %v530_v53 }
 0x13e   : > { %v907_v61 = vpop.f32.mrf.mxu0  ;;  %v1027_v62 = vpop.f32.mrf.mxu1 }
 0x13f   : > { %1177 = vst [vmem:[%s1967_s21 + $0x148] sm:$0xff] %v1081_v21  ;;  %1225 = vst [vmem:[%s1967_s21 + $0x2c8] sm:$0xff] %v1129_v59  ;;  %v1082_v28 = vmax.f32 %v906_v60, 0.0  ;;  %v1130_v37 = vmax.f32 %v1026_v32, 0.0  ;;  %v908_v63 = vadd.f32 %v907_v61, %v1958_v38  ;;  %v1028_v0 = vadd.f32 %v1027_v62, %v530_v53 }
 0x140   : > { %v911_v1 = vpop.f32.mrf.mxu0  ;;  %v1031_v3 = vpop.f32.mrf.mxu1 }
 0x141   : > { %1178 = vst [vmem:[%s1967_s21 + $0x150] sm:$0xff] %v1082_v28  ;;  %1226 = vst [vmem:[%s1967_s21 + $0x2d0] sm:$0xff] %v1130_v37  ;;  %v1083_v4 = vmax.f32 %v908_v63, 0.0  ;;  %v1131_v5 = vmax.f32 %v1028_v0, 0.0  ;;  %v912_v6 = vadd.f32 %v911_v1, %v1960_v39  ;;  %v1032_v7 = vadd.f32 %v1031_v3, %v535_v24 }
 0x142   : > { %v913_v33 = vpop.f32.mrf.mxu0  ;;  %v1033_v22 = vpop.f32.mrf.mxu1 }
 0x143   : > { %1179 = vst [vmem:[%s1967_s21 + $0x158] sm:$0xff] %v1083_v4  ;;  %1227 = vst [vmem:[%s1967_s21 + $0x2d8] sm:$0xff] %v1131_v5  ;;  %v1084_v38 = vmax.f32 %v912_v6, 0.0  ;;  %v1132_v9 = vmax.f32 %v1032_v7, 0.0  ;;  %v914_v10 = vadd.f32 %v913_v33, %v1960_v39  ;;  %v1034_v29 = vadd.f32 %v1033_v22, %v535_v24 }
 0x144   : > { %v915_v25 = vpop.f32.mrf.mxu0  ;;  %v1035_v11 = vpop.f32.mrf.mxu1 }
 0x145   : > { %1180 = vst [vmem:[%s1967_s21 + $0x160] sm:$0xff] %v1084_v38  ;;  %1228 = vst [vmem:[%s1967_s21 + $0x2e0] sm:$0xff] %v1132_v9  ;;  %v1085_v12 = vmax.f32 %v914_v10, 0.0  ;;  %v1133_v13 = vmax.f32 %v1034_v29, 0.0  ;;  %v916_v14 = vadd.f32 %v915_v25, %v1963_v40  ;;  %v1036_v15 = vadd.f32 %v1035_v11, %v540_v8 }
 0x146   : > { %v917_v16 = vpop.f32.mrf.mxu0  ;;  %v1037_v34 = vpop.f32.mrf.mxu1 }
 0x147   : > { %1181 = vst [vmem:[%s1967_s21 + $0x168] sm:$0xff] %v1085_v12  ;;  %1229 = vst [vmem:[%s1967_s21 + $0x2e8] sm:$0xff] %v1133_v13  ;;  %v1086_v39 = vmax.f32 %v916_v14, 0.0  ;;  %v1134_v17 = vmax.f32 %v1036_v15, 0.0  ;;  %v918_v18 = vadd.f32 %v917_v16, %v1963_v40  ;;  %v1038_v20 = vadd.f32 %v1037_v34, %v540_v8 }
 0x149   : > { %1182 = vst [vmem:[%s1967_s21 + $0x170] sm:$0xff] %v1086_v39  ;;  %1230 = vst [vmem:[%s1967_s21 + $0x2f0] sm:$0xff] %v1134_v17  ;;  %v1087_v2 = vmax.f32 %v918_v18, 0.0  ;;  %v1135_v41 = vmax.f32 %v1038_v20, 0.0 }
 0x14b   : > { %1183 = vst [vmem:[%s1967_s21 + $0x178] sm:$0xff] %v1087_v2  ;;  %1231 = vst [vmem:[%s1967_s21 + $0x2f8] sm:$0xff] %v1135_v41 }
 0x14c   : > { %1505 = shalt.err (!%p1502_p5)
}
 0x14d   : > { %s1506_s7 = scalar_lea.hbm %s2110_s28, 12288  ;;  %s1510_s10 = scalar_lea.hbm %s2168_s3, 24576 }
 0x14e   : > { %p1507_p6 = scmp.ne.s32.totalorder %s2110_s28, %s1506_s7  ;;  %p1511_p10 = scmp.lt.s32.totalorder %s2110_s28, %s2168_s3 }
 0x14f   : > { %p1512_p11 = scmp.lt.s32.totalorder %s1510_s10, %s1506_s7 }
 0x150   : > { %p1508_p7 = pnand %p1507_p6, %p1634_p4 }
 0x151   : > { %p1513_p12 = por %p1512_p11, %p1511_p10 }
 0x152   : > { %p1509_p9 = pneg %p1508_p7 }
 0x154   : > { %p1514_p13 = pnand %p1513_p12, %p1509_p9 }
 0x156   : > { %1517 = shalt.err (!%p1514_p13)
}
 0x157   : > { %s1572_s19 = smov 256   ;;  %s1573_s21 = smov 16  }
 0x158   : > { %1400 = dma.vmem_to_hbm [thread:$0]  (%p1634_p4), %s2112_s26, 12288, %s2110_s28, %s2120_s29, %s1572_s19, %s1572_s19, %s1573_s21  }
 0x159 PF: > { %p1406_p0 = scmp.ge.s32.totalorder %s1568_s17, 2  ;;  %s1263_s23 = sand.u32 1, %s1548_s12  }
 0x15a   : > { %s1264_s15 = scalar_lea.sflag [#allocation3], %s1263_s23 }
 0x15b   : > { %p1403_p1 = pnand %p1406_p0, %p1641_p8 }
 0x15d   : > { %p1404_p2 = pneg %p1403_p1 }
 0x15f   : > { %1543 = dma.done.wait (%p1404_p2), %s1264_s15, 12288  }
 0x160   : > { %1545 = vsyncadd (%p1404_p2), %s1264_s15, 4294955008  ;;  %s16_s17 = sadd.s32 1, %s1568_s17   ;;  %s2171_s12 = smov %s1552_s13 }
 0x161   : > { %p13_p3 = scmp.ge.s32.totalorder %s16_s17, 4   ;;  %s2172_s13 = smov %s1556_s14 }
 0x162   : > { %s2173_s14 = smov %s1647_s25  ;;  %s2174_s15 = smov %s1564_s16 }
 0x163   : > { %s2175_s16 = smov %s2177_s20  ;;  %15 = sbr.rel (!%p13_p3) target bundleno = 4 (0x4), region = 67 }
 0x168   :  { %1269 = vsyncpa [#allocation3], 1 }
 0x169   :  { %1271 = vsyncpa [#allocation3 + $0x1], 1 }

</bundles_post_ra>
